<compile_context>
chip_gen: v5e
topology: v5e:2x2
jax: 0.10.0
libtpu: 0.0.40
codegen_flags: <defaults>
</compile_context>

<pallas_src>
import functools

import jax
import jax.numpy as jnp
from jax import lax
from jax.experimental import pallas as pl
from jax.experimental.pallas import tpu as pltpu


# ----------------------------------------------------------------------------
# Generation-aware VMEM budget / tile defaults.
# ----------------------------------------------------------------------------
def _tpu_vmem_capacity_bytes():
    try:
        cap = getattr(pltpu.get_tpu_info(), "vmem_capacity_bytes", None)
        if cap:
            return int(cap)
    except Exception:
        pass
    return 64 * 1024 * 1024   # conservative fallback (v7x per-TC VMEM)


_VMEM_CAP_BYTES = _tpu_vmem_capacity_bytes()
_LARGE_VMEM = _VMEM_CAP_BYTES >= 96 * 1024 * 1024           # v5e / v6e (128 MiB)
_VMEM_LIMIT_BYTES = min((_VMEM_CAP_BYTES * 3) // 4, 100 * 1024 * 1024)

_DEFAULT_BLOCK_M = 512 if _LARGE_VMEM else 256
_DEFAULT_BLOCK_N = 512 if _LARGE_VMEM else 256
_DEFAULT_BLOCK_K = 512
_DEFAULT_BLOCK_Q = 512 if _LARGE_VMEM else 256
_DEFAULT_BLOCK_KV = 1024 if _LARGE_VMEM else 512


def _sublane_align(dtype):
    # 8 sublanes of 32-bit words; sub-32-bit dtypes pack along sublanes
    # (bf16 -> 16, int8 -> 32).
    return max(8, 32 // jnp.dtype(dtype).itemsize)


def _pick_tile(dim, cap, align):
    """Largest tile <= cap that divides `dim` and is `align`-aligned, else full dim."""
    if dim <= cap:
        return dim
    t = (cap // align) * align
    while t >= align:
        if dim % t == 0:
            return t
        t -= align
    # TODO(synk): non-divisible dims fall back to one full tile; a padded /
    # masked tiling path would be needed for very large, oddly-sized inputs.
    return dim


def _split_for_two_cores(tile, dim, align, other_parallel_blocks):
    """If the 'parallel' grid axes would have a single block, try halving the
    tile so both TensorCores of a v7x chip get work (harmless on single-TC)."""
    if other_parallel_blocks * (dim // tile) >= 2:
        return tile
    half = tile // 2
    if half >= align and half % align == 0 and dim % half == 0:
        return half
    return tile


# ----------------------------------------------------------------------------
# Linear: y = x @ W + b   (W stored as (Cin, Cout), i.e. transpose of torch's)
# Grid (R//tm, Cout//tn, Cin//tk); f32 accumulator initialized with the bias.
# ----------------------------------------------------------------------------
def _linear_kernel(x_ref, w_ref, b_ref, o_ref, acc_ref):
    k = pl.program_id(2)

    @pl.when(k == 0)
    def _():
        # Seed the accumulator with the broadcast bias instead of zeroing and
        # adding the bias in the finalize (saves one (tm, tn) add per tile).
        acc_ref[...] = jnp.broadcast_to(
            b_ref[...].astype(jnp.float32), acc_ref.shape)

    # Native-dtype operands on the MXU; f32 accumulation.
    acc_ref[...] += jnp.dot(x_ref[...], w_ref[...],
                            preferred_element_type=jnp.float32)

    @pl.when(k == pl.num_programs(2) - 1)
    def _():
        o_ref[...] = acc_ref[...].astype(o_ref.dtype)


def linear_pallas(x2d, w, b, *, block_m=None, block_n=None, block_k=None):
    R, Cin = x2d.shape
    Cout = w.shape[1]
    block_m = block_m or _DEFAULT_BLOCK_M
    block_n = block_n or _DEFAULT_BLOCK_N
    block_k = block_k or _DEFAULT_BLOCK_K

    m_align = _sublane_align(x2d.dtype)
    tm = _pick_tile(R, block_m, m_align)
    tn = _pick_tile(Cout, block_n, 128)
    tk = _pick_tile(Cin, block_k, 128)
    tm = _split_for_two_cores(tm, R, m_align, Cout // tn)
    grid = (R // tm, Cout // tn, Cin // tk)

    return pl.pallas_call(
        _linear_kernel,
        out_shape=jax.ShapeDtypeStruct((R, Cout), x2d.dtype),
        grid_spec=pltpu.PrefetchScalarGridSpec(
            num_scalar_prefetch=0,
            grid=grid,
            in_specs=[
                pl.BlockSpec((tm, tk), lambda i, j, k: (i, k)),
                pl.BlockSpec((tk, tn), lambda i, j, k: (k, j)),
                pl.BlockSpec((1, tn), lambda i, j, k: (0, j)),
            ],
            out_specs=pl.BlockSpec((tm, tn), lambda i, j, k: (i, j)),
            scratch_shapes=[pltpu.VMEM((tm, tn), jnp.float32)],
        ),
        compiler_params=pltpu.CompilerParams(
            dimension_semantics=("parallel", "parallel", "arbitrary"),
            vmem_limit_bytes=_VMEM_LIMIT_BYTES,
        ),
    )(x2d, w, b.reshape(1, Cout))


# ----------------------------------------------------------------------------
# Attention: grid (B, N//tq, M//tkv).  Per step, all H heads of one
# (batch, q-tile) are processed; online softmax runs over the KV axis.
# Semantics match flash_attn_func(q, k, v) with scale = head_dim**-0.5
# (the scale is folded into the q projection by the wrapper).
# ----------------------------------------------------------------------------
def _attn_body(q, k, v, o_ref, m_sc, l_sc, acc_sc, *, num_heads, recip_approx):
    # q : (tq,  C)  pre-scaled queries, heads head-major in the lane axis
    # k : (tkv, C)  keys   (same head-major layout)
    # v : (tkv, C)  values
    # m_sc, l_sc : (tq, num_heads) f32 lane-packed running max / running sum
    # acc_sc     : (tq, C)         f32 lane-dense running accumulator
    ki = pl.program_id(2)

    @pl.when(ki == 0)
    def _():
        m_sc[...] = jnp.full(m_sc.shape, -jnp.inf, dtype=m_sc.dtype)
        l_sc[...] = jnp.zeros(l_sc.shape, dtype=l_sc.dtype)
        acc_sc[...] = jnp.zeros(acc_sc.shape, dtype=acc_sc.dtype)

    C = q.shape[-1]
    D = C // num_heads

    for h in range(num_heads):
        sl = slice(h * D, (h + 1) * D)
        hs = slice(h, h + 1)
        q_h = q[:, sl]          # (tq, D)  — scale already folded into wq/bq
        k_h = k[:, sl]          # (tkv, D)
        v_h = v[:, sl]          # (tkv, D)

        # Contract the last dim of both operands -> no explicit K transpose.
        s = lax.dot_general(q_h, k_h, (((1,), (1,)), ((), ())),
                            preferred_element_type=jnp.float32)   # (tq, tkv)

        m_prev = m_sc[:, hs]                                       # (tq, 1)
        m_new = jnp.maximum(m_prev, jnp.max(s, axis=-1, keepdims=True))
        alpha = jnp.exp(m_prev - m_new)
        p = jnp.exp(s - m_new)
        l_sc[:, hs] = alpha * l_sc[:, hs] + jnp.sum(p, axis=-1, keepdims=True)
        acc_sc[:, sl] = alpha * acc_sc[:, sl] + jnp.dot(
            p.astype(v_h.dtype), v_h, preferred_element_type=jnp.float32)
        m_sc[:, hs] = m_new

    @pl.when(ki == pl.num_programs(2) - 1)
    def _():
        # Normalize each head's columns in the f32 scratch, then emit a single
        # lane-dense (tq, C) store (no H-way concat, no masked output stores).
        for h in range(num_heads):
            sl = slice(h * D, (h + 1) * D)
            inv = pl.reciprocal(l_sc[:, h:h + 1], approx=recip_approx)
            acc_sc[:, sl] = acc_sc[:, sl] * inv
        o_ref[0] = acc_sc[...].astype(o_ref.dtype)


def _attn_kernel_split(q_ref, k_ref, v_ref, o_ref, m_sc, l_sc, acc_sc, *,
                       num_heads, recip_approx):
    _attn_body(q_ref[0], k_ref[0], v_ref[0], o_ref, m_sc, l_sc, acc_sc,
               num_heads=num_heads, recip_approx=recip_approx)


def _attn_kernel_fused(q_ref, kv_ref, o_ref, m_sc, l_sc, acc_sc, *,
                       num_heads, recip_approx):
    C = q_ref.shape[-1]
    kv = kv_ref[0]
    _attn_body(q_ref[0], kv[:, :C], kv[:, C:], o_ref, m_sc, l_sc, acc_sc,
               num_heads=num_heads, recip_approx=recip_approx)


def attention_pallas(q3, kv3, num_heads, *, block_q=None, block_kv=None):
    # q3: (B, N, C) pre-scaled queries; kv3: (B, M, 2*C) ([.., :C]=K, [.., C:]=V)
    B, N, C = q3.shape
    M = kv3.shape[1]

    block_q = block_q or _DEFAULT_BLOCK_Q
    block_kv = block_kv or _DEFAULT_BLOCK_KV

    q_align = _sublane_align(q3.dtype)
    kv_align = _sublane_align(kv3.dtype)

    # Explicit VMEM budget for the dominant K/V stream: 2 halves x 2 buffers.
    kv_itemsize = jnp.dtype(kv3.dtype).itemsize
    kv_budget = _VMEM_LIMIT_BYTES // 3
    max_tkv = max(kv_align, kv_budget // (4 * C * kv_itemsize))
    block_kv = int(min(block_kv, max_tkv))

    tq = _pick_tile(N, block_q, q_align)
    tkv = _pick_tile(M, block_kv, kv_align)
    tq = _split_for_two_cores(tq, N, q_align, B)
    grid = (B, N // tq, M // tkv)

    # Exact reciprocal for f32 outputs; EUP approx for low-precision outputs.
    recip_approx = bool(jnp.dtype(q3.dtype) != jnp.dtype(jnp.float32))

    # K and V as separate lane-dense refs (block columns 0 / 1 of kv3) when the
    # last-dim block C is 128-aligned; otherwise one fused (1, tkv, 2C) block.
    split_kv = (C % 128 == 0)
    if split_kv:
        kernel = functools.partial(_attn_kernel_split, num_heads=num_heads,
                                   recip_approx=recip_approx)
        in_specs = [
            pl.BlockSpec((1, tq, C), lambda b, qi, ki: (b, qi, 0)),
            pl.BlockSpec((1, tkv, C), lambda b, qi, ki: (b, ki, 0)),   # K half
            pl.BlockSpec((1, tkv, C), lambda b, qi, ki: (b, ki, 1)),   # V half
        ]
        operands = (q3, kv3, kv3)
    else:
        kernel = functools.partial(_attn_kernel_fused, num_heads=num_heads,
                                   recip_approx=recip_approx)
        in_specs = [
            pl.BlockSpec((1, tq, C), lambda b, qi, ki: (b, qi, 0)),
            pl.BlockSpec((1, tkv, 2 * C), lambda b, qi, ki: (b, ki, 0)),
        ]
        operands = (q3, kv3)

    return pl.pallas_call(
        kernel,
        out_shape=jax.ShapeDtypeStruct((B, N, C), q3.dtype),
        grid_spec=pltpu.PrefetchScalarGridSpec(
            num_scalar_prefetch=0,
            grid=grid,
            in_specs=in_specs,
            out_specs=pl.BlockSpec((1, tq, C), lambda b, qi, ki: (b, qi, 0)),
            scratch_shapes=[
                pltpu.VMEM((tq, num_heads), jnp.float32),   # running max (lane-packed)
                pltpu.VMEM((tq, num_heads), jnp.float32),   # running sum (lane-packed)
                pltpu.VMEM((tq, C), jnp.float32),           # running acc (lane-dense)
            ],
        ),
        compiler_params=pltpu.CompilerParams(
            dimension_semantics=("parallel", "parallel", "arbitrary"),
            vmem_limit_bytes=_VMEM_LIMIT_BYTES,
        ),
    )(*operands)


# ----------------------------------------------------------------------------
# CrossAttention forward
# ----------------------------------------------------------------------------
def cross_attention(x, context, params, num_heads, *, block_q=None, block_kv=None):
    B, N, C = x.shape
    _, M, _ = context.shape
    D = C // num_heads
    scale = D ** (-0.5)

    # Fold the softmax scale into the q projection weights/bias (applied once
    # per call in the weight dtype) — removes the per-head scale multiply from
    # the attention kernel entirely.
    wq = (params["wq"].astype(jnp.float32) * scale).astype(params["wq"].dtype)
    bq = (params["bq"].astype(jnp.float32) * scale).astype(params["bq"].dtype)

    q = linear_pallas(x.reshape(B * N, C), wq, bq)
    kv = linear_pallas(context.reshape(B * M, C), params["wkv"], params["bkv"])

    q3 = q.reshape(B, N, C)
    kv3 = kv.reshape(B, M, 2 * C)

    o = attention_pallas(q3, kv3, num_heads,
                         block_q=block_q, block_kv=block_kv)   # (B, N, C)

    # TODO(synk): optionally fuse the output projection into the attention
    # finalize to save one (B, N, C) HBM round trip (biggest win on v5e).
    out = linear_pallas(o.reshape(B * N, C), params["wproj"], params["bproj"])
    return out.reshape(B, N, C)


# ----------------------------------------------------------------------------
# Pure-JAX reference (for sanity check)
# ----------------------------------------------------------------------------
def cross_attention_ref(x, context, params, num_heads):
    B, N, C = x.shape
    _, M, _ = context.shape
    D = C // num_heads
    scale = D ** (-0.5)
    q = (x @ params["wq"] + params["bq"]).reshape(B, N, num_heads, D)
    kv = (context @ params["wkv"] + params["bkv"]).reshape(B, M, 2, num_heads, D)
    k, v = kv[:, :, 0], kv[:, :, 1]
    s = jnp.einsum("bnhd,bmhd->bhnm", q, k) * scale
    p = jax.nn.softmax(s, axis=-1)
    o = jnp.einsum("bhnm,bmhd->bnhd", p, v).reshape(B, N, C)
    return o @ params["wproj"] + params["bproj"]


def init_params(key, dim, qkv_bias=False, proj_bias=True, zero_init=False,
                dtype=jnp.float32):
    k1, k2, k3, k4 = jax.random.split(key, 4)
    std = 0.02
    params = {
        "wq": jax.random.normal(k1, (dim, dim), dtype) * std,
        "bq": jnp.zeros((dim,), dtype),          # qkv_bias=False -> zeros
        "wkv": jax.random.normal(k2, (dim, 2 * dim), dtype) * std,
        "bkv": jnp.zeros((2 * dim,), dtype),
        "wproj": jax.random.normal(k3, (dim, dim), dtype) * std,
        "bproj": jax.random.normal(k4, (dim,), dtype) * std if proj_bias
                 else jnp.zeros((dim,), dtype),
    }
    if zero_init:
        params["wproj"] = jnp.zeros_like(params["wproj"])
        params["bproj"] = jnp.zeros_like(params["bproj"])
    return params


if __name__ == "__main__":
    key = jax.random.PRNGKey(0)

    # Config 1: small dim (C < 128) -> fused-KV in-kernel split path.
    B, N, M, C, H = 2, 8, 16, 32, 8
    kx, kc, kp, key = jax.random.split(key, 4)
    x = jax.random.normal(kx, (B, N, C), jnp.float32)
    context = jax.random.normal(kc, (B, M, C), jnp.float32)
    params = init_params(kp, C)

    ref = cross_attention_ref(x, context, params, H)
    out = jax.block_until_ready(cross_attention(x, context, params, H))
    assert out.shape == (B, N, C)
    assert jnp.allclose(out, ref, atol=2e-3, rtol=2e-3)

    # Exercise the online-softmax KV-tiled path (M=16 -> two KV steps).
    out2 = jax.block_until_ready(
        cross_attention(x, context, params, H, block_kv=8))
    assert jnp.allclose(out2, ref, atol=2e-3, rtol=2e-3)

    # Config 2: lane-aligned dim (C = 128, D = 64) -> split lane-dense K/V refs,
    # also with two KV steps.
    B2, N2, M2, C2, H2 = 2, 8, 16, 128, 2
    kx2, kc2, kp2, key = jax.random.split(key, 4)
    x2 = jax.random.normal(kx2, (B2, N2, C2), jnp.float32)
    context2 = jax.random.normal(kc2, (B2, M2, C2), jnp.float32)
    params2 = init_params(kp2, C2)

    ref2 = cross_attention_ref(x2, context2, params2, H2)
    out3 = jax.block_until_ready(cross_attention(x2, context2, params2, H2))
    assert out3.shape == (B2, N2, C2)
    assert jnp.allclose(out3, ref2, atol=2e-3, rtol=2e-3)
    out4 = jax.block_until_ready(
        cross_attention(x2, context2, params2, H2, block_kv=8))
    assert jnp.allclose(out4, ref2, atol=2e-3, rtol=2e-3)

    print("KERNEL_OK")
</pallas_src>

<mosaic_0001>
module attributes {stable_mosaic.version = 11 : i64} {
  func.func @_linear_kernel(%arg0: i32, %arg1: i32, %arg2: i32, %arg3: memref<8x32xf32, #tpu.memory_space<vmem>>, %arg4: memref<32x32xf32, #tpu.memory_space<vmem>>, %arg5: memref<1x32xf32, #tpu.memory_space<vmem>>, %arg6: memref<8x32xf32, #tpu.memory_space<vmem>>, %arg7: memref<8x32xf32, #tpu.memory_space<vmem>>) attributes {dimension_semantics = [#tpu.dimension_semantics<parallel>, #tpu.dimension_semantics<parallel>, #tpu.dimension_semantics<arbitrary>], iteration_bounds = array<i64: 2, 1, 1>, scalar_prefetch = 0 : i64, scratch_operands = 1 : i64, tpu.core_type = #tpu.core_type<tc>, window_params = [{transform_indices = @transform_0, window_bounds = array<i64: 8, 32>}, {transform_indices = @transform_1, window_bounds = array<i64: 32, 32>}, {transform_indices = @transform_2, window_bounds = array<i64: 1, 32>}, {transform_indices = @transform_3, window_bounds = array<i64: 8, 32>}]} {
    %c0_i32 = arith.constant 0 : i32
    %0 = arith.cmpi eq, %arg2, %c0_i32 : i32
    %1 = arith.extui %0 : i1 to i32
    %c0_i32_0 = arith.constant 0 : i32
    %2 = arith.cmpi ne, %1, %c0_i32_0 : i32
    scf.if %2 {
      %c0_10 = arith.constant 0 : index
      %c0_11 = arith.constant 0 : index
      %12 = vector.load %arg5[%c0_10, %c0_11] : memref<1x32xf32, #tpu.memory_space<vmem>>, vector<1x32xf32>
      %13 = vector.shape_cast %12 : vector<1x32xf32> to vector<1x32xf32>
      %14 = vector.broadcast %13 : vector<1x32xf32> to vector<8x32xf32>
      %c0_12 = arith.constant 0 : index
      %c0_13 = arith.constant 0 : index
      %15 = vector.load %arg7[%c0_12, %c0_13] : memref<8x32xf32, #tpu.memory_space<vmem>>, vector<8x32xf32>
      tpu.vector_store %arg7[%c0_12, %c0_13], %14 {strides = array<i32>} : memref<8x32xf32, #tpu.memory_space<vmem>>, vector<8x32xf32>,
    } else {
    }
    %c0 = arith.constant 0 : index
    %c0_1 = arith.constant 0 : index
    %3 = vector.load %arg7[%c0, %c0_1] : memref<8x32xf32, #tpu.memory_space<vmem>>, vector<8x32xf32>
    %c0_2 = arith.constant 0 : index
    %c0_3 = arith.constant 0 : index
    %4 = vector.load %arg3[%c0_2, %c0_3] : memref<8x32xf32, #tpu.memory_space<vmem>>, vector<8x32xf32>
    %c0_4 = arith.constant 0 : index
    %c0_5 = arith.constant 0 : index
    %5 = vector.load %arg4[%c0_4, %c0_5] : memref<32x32xf32, #tpu.memory_space<vmem>>, vector<32x32xf32>
    %cst = arith.constant dense<0.000000e+00> : vector<8x32xf32>
    %6 = tpu.matmul %4, %5, %cst {dimension_numbers = #tpu.dot_dimension_numbers<[1], [0], [0], [1], [0, 0, 1, 1], [], []>} : vector<8x32xf32>, vector<32x32xf32>, vector<8x32xf32> -> vector<8x32xf32>
    %7 = arith.addf %3, %6 : vector<8x32xf32>
    %c0_6 = arith.constant 0 : index
    %c0_7 = arith.constant 0 : index
    %8 = vector.load %arg7[%c0_6, %c0_7] : memref<8x32xf32, #tpu.memory_space<vmem>>, vector<8x32xf32>
    tpu.vector_store %arg7[%c0_6, %c0_7], %7 {strides = array<i32>} : memref<8x32xf32, #tpu.memory_space<vmem>>, vector<8x32xf32>,
    %c0_i32_8 = arith.constant 0 : i32
    %9 = arith.cmpi eq, %arg2, %c0_i32_8 : i32
    %10 = arith.extui %9 : i1 to i32
    %c0_i32_9 = arith.constant 0 : i32
    %11 = arith.cmpi ne, %10, %c0_i32_9 : i32
    scf.if %11 {
      %c0_10 = arith.constant 0 : index
      %c0_11 = arith.constant 0 : index
      %12 = vector.load %arg7[%c0_10, %c0_11] : memref<8x32xf32, #tpu.memory_space<vmem>>, vector<8x32xf32>
      %c0_12 = arith.constant 0 : index
      %c0_13 = arith.constant 0 : index
      %13 = vector.load %arg6[%c0_12, %c0_13] : memref<8x32xf32, #tpu.memory_space<vmem>>, vector<8x32xf32>
      tpu.vector_store %arg6[%c0_12, %c0_13], %12 {strides = array<i32>} : memref<8x32xf32, #tpu.memory_space<vmem>>, vector<8x32xf32>,
    } else {
    }
    return
  }
  func.func @transform_0(%arg0: i32, %arg1: i32, %arg2: i32) -> (i32, i32) {
    %c0_i32 = arith.constant 0 : i32
    return %arg0, %arg2 : i32, i32
  }
  func.func @transform_1(%arg0: i32, %arg1: i32, %arg2: i32) -> (i32, i32) {
    %c0_i32 = arith.constant 0 : i32
    return %arg2, %arg1 : i32, i32
  }
  func.func @transform_2(%arg0: i32, %arg1: i32, %arg2: i32) -> (i32, i32) {
    %c0_i32 = arith.constant 0 : i32
    %c0_i32_0 = arith.constant 0 : i32
    return %c0_i32, %arg1 : i32, i32
  }
  func.func @transform_3(%arg0: i32, %arg1: i32, %arg2: i32) -> (i32, i32) {
    %c0_i32 = arith.constant 0 : i32
    return %arg0, %arg1 : i32, i32
  }
}

</mosaic_0001>

<bundles_post_ra>
// kernel: tpu_custom_call.1
= control target key start
LH: loop header
LB: loop body
LE: loop exit
PB: predicated region body
PF: predicated region fallthrough
CT: control target
= control target key end

     0   :  { %8 = vsyncpa [#allocation4], 0  ;;  %s842_s0 = inlined_call_operand.hbm [shape: f32[16,32], index: 0, kind: input, shape index: {}]   ;;  %s843_s1 = inlined_call_operand.hbm [shape: f32[32,32], index: 1, kind: input, shape index: {}]   ;;  %s844_s2 = inlined_call_operand.vmem [shape: f32[1,32], index: 2, kind: input, shape index: {}]   ;;  %s845_s3 = inlined_call_operand.hbm [shape: f32[16,32], index: 3, kind: output, shape index: {}]  }
   0x1   :  { %10 = vsyncpa [#allocation4 + $0x1], 0 }
   0x2   :  { %11 = vsyncpa [#allocation7], 0 }
   0x3   :  { %12 = vsyncpa [#allocation5], 0 }
   0x4   :  { %14 = vsyncpa [#allocation5 + $0x1], 0  ;;  %s692_s12 = smov 0   ;;  %s694_s13 = smov 0  }
   0x5   :  { %s696_s14 = smov 0   ;;  %s698_s15 = smov 0  }
   0x6   :  { %s700_s16 = smov 0   ;;  %s702_s17 = smov 0  }
   0x7 LB: > { %s428_s18 = sadd.s32 4294967295, %s667_s17   ;;  %p430_p0 = scmp.ge.s32.totalorder %s667_s17, 1  ;;  %s667_s17 = sphi %s702_s17, %s20_s17   ;;  %s663_s16 = sphi %s700_s16, %s856_s16   ;;  %s659_s15 = sphi %s698_s15, %s855_s15   ;;  %s655_s14 = sphi %s696_s14, %s854_s14   ;;  %s651_s13 = sphi %s694_s13, %s853_s13   ;;  %s647_s12 = sphi %s692_s12, %s852_s12  }
   0x8   : > { %p724_p1 = scmp.eq.s32.totalorder %s428_s18, 0  ;;  %p154_p2 = scmp.lt.s32.totalorder %s667_s17, 3 }
   0x9   : > { %s169_s22 = sshll.u32 %s843_s1, 4  ;;  %s669_s24 = smov [#allocation6]   ;;  %s170_s22 = int_to_ptr.hbm [resolvable:$true] %s169_s22 }
   0xa   : > { %p732_p3 = pnand %p430_p0, %p154_p2  ;;  %s171_s25 = sshll.u32 %s669_s24, 4  ;;  %s172_s25 = int_to_ptr.vmem [resolvable:$true] %s171_s25 }
   0xb   : > { %p433_p6 = scmp.ge.s32.totalorder %s667_s17, 2  ;;  %s670_s26 = smov 128  }
   0xc   : > { %p453_p4 = pneg %p732_p3  ;;  %s671_s27 = smov 8  }
   0xd   : > { %s429_s28 = sadd.s32 4294967294, %s667_s17   ;;  %s39_s29 = sadd.s32 1, %s663_s16 }
   0xe   : > { %p454_p5 = pnand %p453_p4, %p724_p1  ;;  %s48_s30 = sadd.s32 1, %s655_s14 }
   0xf   : > { %p41_p7 = scmp.ge.s32.totalorder %s39_s29, 2  ;;  %p55_p8 = scmp.ne.s32.totalorder %s655_s14, %s651_s13 }
  0x10   : > { %456 = dma.hbm_to_vmem [thread:$0]  (!%p454_p5), %s170_s22, 512, %s172_s25, [#allocation7], %s670_s26, %s670_s26, %s671_s27  }
  0x11   : > { %p56_p9 = scmp.eq.s32.totalorder %s667_s17, 0  ;;  %p61_p10 = scmp.ne.s32.totalorder %s651_s13, %s647_s12 }
  0x12   : > { %s858_s29 = smov (%p41_p7, %s39_s29), 0  ;;  %p141_p13 = scmp.eq.s32.totalorder %s428_s18, 1 }
  0x13   : > { %p751_p11 = por %p56_p9, %p55_p8  ;;  %p757_p12 = por %p724_p1, %p61_p10 }
  0x14   : > { %s43_s6 = ssub.s32 %s663_s16, %s858_s29  ;;  %p147_p2 = scmp.eq.s32.totalorder %s429_s28, 1 }
  0x15   : > { %p46_p0 = scmp.eq.s32.totalorder %s43_s6, 0  ;;  %p763_p4 = por %p141_p13, %p55_p8 }
  0x16   : > { %p466_p5 = scmp.lt.s32.totalorder %s667_s17, 2  ;;  %p771_p7 = por %p147_p2, %p61_p10 }
  0x17   : > { %s769_s8 = scalar_select %p46_p0, %s655_s14, %s48_s30  }
  0x18   : > { %s191_s10 = sand.u32 1, %s655_s14   ;;  %s435_s20 = sshll.u32 %s663_s16, 3 }
  0x19   : > { %s434_s11 = sshll.u32 %s191_s10, 3  ;;  %s200_s18 = scalar_lea.hbm %s842_s0, %s435_s20 }
  0x1a   : > { %s195_s24 = scalar_lea.vmem [#allocation3], %s434_s11  ;;  %s202_s26 = sshll.u32 %s200_s18, 4  ;;  %s203_s26 = int_to_ptr.hbm [resolvable:$true] %s202_s26 }
  0x1b   : > { %s204_s25 = sshll.u32 %s195_s24, 4  ;;  %p458_p8 = pnand %p466_p5, %p751_p11  ;;  %s205_s25 = int_to_ptr.vmem [resolvable:$true] %s204_s25 }
  0x1c   : > { %s192_s27 = scalar_lea.sflag [#allocation4], %s191_s10  ;;  %213 = sbr.rel (%p732_p3) target bundleno = 183 (0xb7), region = 32 }
  0x1d   : > { %460 = dma.hbm_to_vmem [thread:$0]  (!%p458_p8), %s203_s26, 128, %s205_s25, %s192_s27  }
  0x1e   : > { %s785_s28 = sand.u32 (!%p732_p3), 1, %s651_s13  }
  0x1f   : > { %s437_s30 = sshll.u32 (!%p732_p3), %s785_s28, 3  ;;  %s216_s6 = scalar_lea.sflag (!%p732_p3), [#allocation4], %s785_s28 }
  0x20   : > { %s219_s11 = scalar_lea.vmem (!%p732_p3), [#allocation3], %s437_s30 }
  0x21   : > { %634 = dma.done.wait (%p757_p12), %s216_s6, 128  }
  0x22   : > { %636 = vsyncadd (%p757_p12), %s216_s6, 4294967168 }
  0x23   : > { %638 = dma.done.wait (%p724_p1), [#allocation7], 512  }
  0x24   : > { %640 = vsyncadd (%p724_p1), [#allocation7], 4294966784  ;;  %v270_v0 = vld [vmem:[#allocation6 + $0x18] sm:$0xff]  ;;  %v269_v1 = vld [vmem:[#allocation6 + $0x10] sm:$0xff]  ;;  %vm263_vm0 = vcmask 261120   ;;  %s442_s19 = sshll.u32 %s659_s15, 3 }
  0x25   : > { %287 = vmatpush.msra.mxu0 %v270_v0  ;;  %v520_v2 = vld [vmem:[%s844_s2] ss:$0 sm:$0xff]  ;;  %v267_v4 = vld [vmem:[#allocation6] sm:$0xff]  ;;  %v266_v5 = vld [vmem:[%s219_s11] sm:$0xff]  ;;  %s314_s20 = scalar_lea.hbm %s845_s3, %s442_s19  ;;  %s250_s21 = scalar_lea.vmem [#allocation8], %s437_s30 }
  0x26   : > { %v268_v3 = vld [vmem:[#allocation6 + $0x8] sm:$0xff]  ;;  %264 = vst.msk [vmem:[#allocation2] sm:$0xff] %vm263_vm0, %v520_v2  ;;  %s316_s22 = sshll.u32 %s250_s21, 4  ;;  %s318_s18 = sshll.u32 %s314_s20, 4  ;;  %s317_s22 = int_to_ptr.vmem [resolvable:$true] %s316_s22  ;;  %s319_s18 = int_to_ptr.hbm [resolvable:$true] %s318_s18 }
  0x27   : > { %288 = vmatpush.msra.mxu0 %v269_v1  ;;  %s303_s24 = scalar_lea.sflag [#allocation5], %s785_s28  ;;  %s595_s25 = sshra.s32 %s319_s18, 4  ;;  %s596_s25 = int_to_ptr.hbm [resolvable:$true] %s595_s25 }
  0x28   : > { %s597_s15 = scalar_lea.hbm %s596_s25, 8  ;;  %s601_s6 = scalar_lea.hbm %s845_s3, 16 }
  0x29   : > { %289 = vmatpush.msra.mxu0 %v268_v3  ;;  %p598_p1 = scmp.ne.s32.totalorder %s596_s25, %s597_s15  ;;  %p602_p10 = scmp.lt.s32.totalorder %s596_s25, %s845_s3 }
  0x2a   : > { %p603_p11 = scmp.lt.s32.totalorder %s601_s6, %s597_s15 }
  0x2b   : > { %290 = vmatpush.msra.mxu0 %v267_v4  ;;  %p599_p3 = pnand %p598_p1, %p763_p4 }
  0x2c   : > { %440 = vmatmul.msk.f32.vlgmr.msra.gmra.mxu0 %vm263_vm0, %v266_v5  ;;  %p604_p12 = por %p603_p11, %p602_p10 }
  0x2d   : > { %v265_v6 = vld [vmem:[#allocation2] sm:$0xff]  ;;  %p600_p9 = pneg %p599_p3 }
  0x2f   : > { %p605_p13 = pnand %p604_p12, %p600_p9 }
  0xa9   : > { %v292_v7 = vpop.f32.mrf.mxu0 }
  0xaa   : > { %v295_v8 = vadd.f32 %v292_v7, %v265_v6 }
  0xac   : > { %296 = vst.msk [vmem:[#allocation2] sm:$0xff] %vm263_vm0, %v295_v8 }
  0xb3   : > { %v300_v9 = vld [vmem:[#allocation2] sm:$0xff] }
  0xb4   : > { %301 = vst.msk [vmem:[%s250_s21] sm:$0xff] %vm263_vm0, %v300_v9 }
  0xb5   : > { %608 = shalt.err (!%p605_p13)
}
  0xb6   : > { %451 = dma.vmem_to_hbm [thread:$0]  (%p763_p4), %s317_s22, 128, %s319_s18, %s303_s24  }
  0xb7 PF: > { %s330_s28 = sand.u32 1, %s647_s12   ;;  %p462_p0 = pnand %p433_p6, %p771_p7 }
  0xb8   : > { %s331_s23 = scalar_lea.sflag [#allocation5], %s330_s28 }
  0xb9   : > { %p463_p2 = pneg %p462_p0 }
  0xbb   : > { %642 = dma.done.wait (%p463_p2), %s331_s23, 128  }
  0xbc   : > { %644 = vsyncadd (%p463_p2), %s331_s23, 4294967168  ;;  %s20_s17 = sadd.s32 1, %s667_s17   ;;  %s852_s12 = smov %s651_s13 }
  0xbd   : > { %p17_p5 = scmp.ge.s32.totalorder %s20_s17, 4   ;;  %s853_s13 = smov %s655_s14 }
  0xbe   : > { %s854_s14 = smov %s769_s8  ;;  %s855_s15 = smov %s663_s16 }
  0xbf   : > { %s856_s16 = smov %s858_s29  ;;  %19 = sbr.rel (!%p17_p5) target bundleno = 7 (0x7), region = 93 }
  0xc4   :  { %337 = vsyncpa [#allocation4], 1 }
  0xc5   :  { %339 = vsyncpa [#allocation4 + $0x1], 1 }
  0xc6   :  { %340 = vsyncpa [#allocation7], 1 }
  0xc7   :  { %341 = vsyncpa [#allocation5], 1 }
  0xc8   :  { %343 = vsyncpa [#allocation5 + $0x1], 1 }

</bundles_post_ra>
